<compile_context>
chip_gen: v5e
topology: v5e:2x2
jax: 0.10.0
libtpu: 0.0.40
codegen_flags: <defaults>
</compile_context>

<pallas_src>
import functools
import numpy as np
import jax
import jax.numpy as jnp
from jax.experimental import pallas as pl
from jax.experimental.pallas import tpu as pltpu


# ----------------------------- parameter setup (deterministic, plain numpy) --

def _round_up(x, m):
    return ((x + m - 1) // m) * m


def _hann_window(n_fft):
    # torch.hann_window(periodic=True)
    n = np.arange(n_fft, dtype=np.float64)
    return 0.5 * (1.0 - np.cos(2.0 * np.pi * n / n_fft))


def _melscale_fbanks(n_freq, f_min, f_max, n_mels, sample_rate):
    # torchaudio.functional.melscale_fbanks with mel_scale="htk", norm=None.
    all_freqs = np.linspace(0.0, sample_rate / 2.0, n_freq)
    m_min = 2595.0 * np.log10(1.0 + f_min / 700.0)
    m_max = 2595.0 * np.log10(1.0 + f_max / 700.0)
    m_pts = np.linspace(m_min, m_max, n_mels + 2)
    f_pts = 700.0 * (10.0 ** (m_pts / 2595.0) - 1.0)
    f_diff = f_pts[1:] - f_pts[:-1]                      # (n_mels+1,)
    slopes = f_pts[None, :] - all_freqs[:, None]         # (n_freq, n_mels+2)
    down_slopes = (-slopes[:, :-2]) / f_diff[:-1]
    up_slopes = slopes[:, 2:] / f_diff[1:]
    fb = np.maximum(0.0, np.minimum(down_slopes, up_slopes))  # (n_freq, n_mels)
    return fb


def _build_constants(sample_rate, n_fft, n_mels, f_min, f_max, use_bf16):
    """Window-folded fused DFT matrix W=[cos|-sin] and doubled mel filterbank."""
    n_freq = n_fft // 2 + 1
    fb = _melscale_fbanks(n_freq, f_min, f_max, n_mels, sample_rate)

    # Drop trailing frequency bins whose mel weights are all zero (e.g. the
    # Nyquist bin when f_max == sample_rate/2). Exact: those bins contribute
    # nothing to the mel output regardless of the power spectrum.
    nz = np.nonzero(np.any(fb != 0.0, axis=1))[0]
    n_keep = int(nz[-1]) + 1 if nz.size else 1
    n_freq_pad = _round_up(n_keep, 128)
    n_mels_pad = _round_up(n_mels, 128)
    n_dft = 2 * n_freq_pad

    win = _hann_window(n_fft)
    n = np.arange(n_fft, dtype=np.float64)[:, None]
    k = np.arange(n_keep, dtype=np.float64)[None, :]
    ang = 2.0 * np.pi * n * k / n_fft
    cos_w = np.cos(ang) * win[:, None]      # Hann window folded into the DFT
    sin_w = -np.sin(ang) * win[:, None]

    W = np.zeros((n_fft, n_dft), dtype=np.float32)
    W[:, :n_keep] = cos_w
    W[:, n_freq_pad:n_freq_pad + n_keep] = sin_w

    # Stacked filterbank: power = y*y (y = [re|im]) contracted once gives
    # re^2 @ fb + im^2 @ fb.  Columns beyond n_mels are zero padding.
    fb2 = np.zeros((n_dft, n_mels_pad), dtype=np.float32)
    fb2[:n_keep, :n_mels] = fb[:n_keep].astype(np.float32)
    fb2[n_freq_pad:n_freq_pad + n_keep, :n_mels] = fb[:n_keep].astype(np.float32)

    dft_dtype = jnp.bfloat16 if use_bf16 else jnp.float32
    return (jnp.asarray(W, dtype=dft_dtype),     # (n_fft, n_dft)
            jnp.asarray(fb2),                    # (n_dft, n_mels_pad) f32
            n_dft, n_mels_pad)


# ----------------------------- Pallas kernel ---------------------------------

def _melspec_log_kernel(frames_ref, dft_ref, fb_ref, out_ref, *, offset):
    # frames_ref: (tm, n_fft)              (window already folded into dft_ref)
    # dft_ref:    (n_fft, 2*n_freq_pad)    = [windowed cos | windowed -sin]
    # fb_ref:     (2*n_freq_pad, n_mels_pad)
    y = jnp.dot(frames_ref[...], dft_ref[...],
                preferred_element_type=jnp.float32)            # MXU: fused re|im
    power = y * y                                              # VPU
    mel = jnp.dot(power, fb_ref[...],
                  preferred_element_type=jnp.float32)          # MXU: mel fbank
    # LogScale compression: clamp(min=offset) then log2
    out_ref[...] = jnp.log2(jnp.maximum(mel, offset))


# ----------------------------- wrapper ----------------------------------------

def _log_mel_rep(wav, *, sample_rate, n_fft, hop_length, n_mels, f_min, f_max,
                 offset, tm, use_bf16):
    wav = wav.astype(jnp.float32)
    B, T = wav.shape

    W, fb2, n_dft, n_mels_pad = _build_constants(
        sample_rate, n_fft, n_mels, f_min, f_max, use_bf16)

    # STFT framing (center=True, reflect padding) — glue in plain JAX.
    # TODO(synk): move framing into the kernel (hop-strided pl.ds reads of the
    # padded waveform) to avoid materializing the duplicated frame matrix.
    pad = n_fft // 2
    padded = jnp.pad(wav, ((0, 0), (pad, pad)), mode="reflect")
    n_frames = 1 + T // hop_length
    idx = (np.arange(n_frames)[:, None] * hop_length
           + np.arange(n_fft)[None, :])                         # (n_frames, n_fft)
    frames = padded[:, idx].reshape(B * n_frames, n_fft)        # (M, n_fft)

    M = B * n_frames
    tm_eff = min(tm, _round_up(M, 8))          # keep sublane alignment, avoid
    M_pad = _round_up(M, tm_eff)               # huge padding for tiny inputs
    frames = jnp.pad(frames, ((0, M_pad - M), (0, 0)))
    if use_bf16:
        frames = frames.astype(jnp.bfloat16)

    cost = pl.CostEstimate(
        flops=2 * M_pad * n_fft * n_dft + 2 * M_pad * n_dft * n_mels_pad,
        transcendentals=M_pad * n_mels_pad,
        bytes_accessed=4 * (M_pad * n_fft + M_pad * n_mels_pad
                            + n_fft * n_dft + n_dft * n_mels_pad),
    )

    out = pl.pallas_call(
        functools.partial(_melspec_log_kernel, offset=float(offset)),
        out_shape=jax.ShapeDtypeStruct((M_pad, n_mels_pad), jnp.float32),
        grid_spec=pltpu.PrefetchScalarGridSpec(
            num_scalar_prefetch=0,
            grid=(M_pad // tm_eff,),
            in_specs=[
                pl.BlockSpec((tm_eff, n_fft), lambda i: (i, 0)),
                pl.BlockSpec((n_fft, n_dft), lambda i: (0, 0)),
                pl.BlockSpec((n_dft, n_mels_pad), lambda i: (0, 0)),
            ],
            out_specs=pl.BlockSpec((tm_eff, n_mels_pad), lambda i: (i, 0)),
        ),
        compiler_params=pltpu.CompilerParams(
            dimension_semantics=("parallel",)),
        cost_estimate=cost,
    )(frames, W, fb2)

    mel = out[:M, :n_mels].reshape(B, n_frames, n_mels)
    return jnp.transpose(mel, (0, 2, 1))       # (B, n_mels, n_frames)


def audio_to_audio_representation(foreground_wav, background_wav=None, *,
                                  sample_rate=16000, n_fft=256, hop_length=128,
                                  n_mels=32, f_min=0.0, f_max=None,
                                  offset=1e-6, tm=256, use_bf16=False):
    """rep_type='mel_spec', compression_type='log' (LogScale applied to the mel
    spectrogram).  Both foreground and background are processed, mirroring
    LogScale.forward(foreground, background)."""
    if f_max is None:
        f_max = sample_rate / 2.0
    kw = dict(sample_rate=sample_rate, n_fft=n_fft, hop_length=hop_length,
              n_mels=n_mels, f_min=f_min, f_max=f_max, offset=offset,
              tm=tm, use_bf16=use_bf16)
    fg = _log_mel_rep(foreground_wav, **kw) if foreground_wav is not None else None
    bg = _log_mel_rep(background_wav, **kw) if background_wav is not None else None
    return fg, bg

# TODO(synk): rep_type='cochleagram' (chcochleagram filterbank + Hilbert envelope
# + polyphase downsampling) and 'coch_p3' compression have no compact Pallas
# equivalent here; only the mel_spec + log path is implemented.


if __name__ == "__main__":
    key = jax.random.PRNGKey(0)
    k_fg, k_bg = jax.random.split(key)
    B, T = 2, 2048
    foreground = jax.random.normal(k_fg, (B, T), dtype=jnp.float32)
    background = jax.random.normal(k_bg, (B, T), dtype=jnp.float32)

    fg_rep, bg_rep = audio_to_audio_representation(
        foreground, background, sample_rate=16000, n_fft=256, hop_length=128,
        n_mels=32, offset=1e-6)
    fg_rep = jax.block_until_ready(fg_rep)
    bg_rep = jax.block_until_ready(bg_rep)

    n_frames = 1 + T // 128
    assert fg_rep.shape == (B, 32, n_frames)
    assert bg_rep.shape == (B, 32, n_frames)
    assert bool(jnp.all(jnp.isfinite(fg_rep)))
    assert bool(jnp.all(jnp.isfinite(bg_rep)))

    # Foreground-only call still returns None for background (LogScale semantics).
    only_fg, none_bg = audio_to_audio_representation(foreground, None)
    jax.block_until_ready(only_fg)
    assert none_bg is None

    print("KERNEL_OK")
</pallas_src>

<mosaic_0001>
module attributes {stable_mosaic.version = 11 : i64} {
  func.func @_melspec_log_kernel(%arg0: i32, %arg1: memref<40x256xf32, #tpu.memory_space<vmem>>, %arg2: memref<256x512xf32, #tpu.memory_space<vmem>>, %arg3: memref<512x128xf32, #tpu.memory_space<vmem>>, %arg4: memref<40x128xf32, #tpu.memory_space<vmem>>) attributes {dimension_semantics = [#tpu.dimension_semantics<parallel>], iteration_bounds = array<i64: 1>, scalar_prefetch = 0 : i64, scratch_operands = 0 : i64, tpu.core_type = #tpu.core_type<tc>, window_params = [{transform_indices = @transform_0, window_bounds = array<i64: 40, 256>}, {pipeline_mode = #tpu.pipeline_mode<synchronous>, transform_indices = @transform_1, window_bounds = array<i64: 256, 512>}, {pipeline_mode = #tpu.pipeline_mode<synchronous>, transform_indices = @transform_2, window_bounds = array<i64: 512, 128>}, {transform_indices = @transform_3, window_bounds = array<i64: 40, 128>}]} {
    %c0 = arith.constant 0 : index
    %c0_0 = arith.constant 0 : index
    %0 = vector.load %arg1[%c0, %c0_0] : memref<40x256xf32, #tpu.memory_space<vmem>>, vector<40x256xf32>
    %c0_1 = arith.constant 0 : index
    %c0_2 = arith.constant 0 : index
    %1 = vector.load %arg2[%c0_1, %c0_2] : memref<256x512xf32, #tpu.memory_space<vmem>>, vector<256x512xf32>
    %cst = arith.constant dense<0.000000e+00> : vector<40x512xf32>
    %2 = tpu.matmul %0, %1, %cst {dimension_numbers = #tpu.dot_dimension_numbers<[1], [0], [0], [1], [0, 0, 1, 1], [], []>} : vector<40x256xf32>, vector<256x512xf32>, vector<40x512xf32> -> vector<40x512xf32>
    %3 = arith.mulf %2, %2 : vector<40x512xf32>
    %c0_3 = arith.constant 0 : index
    %c0_4 = arith.constant 0 : index
    %4 = vector.load %arg3[%c0_3, %c0_4] : memref<512x128xf32, #tpu.memory_space<vmem>>, vector<512x128xf32>
    %cst_5 = arith.constant dense<0.000000e+00> : vector<40x128xf32>
    %5 = tpu.matmul %3, %4, %cst_5 {dimension_numbers = #tpu.dot_dimension_numbers<[1], [0], [0], [1], [0, 0, 1, 1], [], []>} : vector<40x512xf32>, vector<512x128xf32>, vector<40x128xf32> -> vector<40x128xf32>
    %cst_6 = arith.constant 9.99999997E-7 : f32
    %6 = vector.broadcast %cst_6 : f32 to vector<40x128xf32>
    %7 = arith.maximumf %5, %6 : vector<40x128xf32>
    %8 = math.log %7 : vector<40x128xf32>
    %cst_7 = arith.constant 2.000000e+00 : f32
    %9 = math.log %cst_7 : f32
    %10 = vector.broadcast %9 : f32 to vector<40x128xf32>
    %11 = arith.divf %8, %10 : vector<40x128xf32>
    %c0_8 = arith.constant 0 : index
    %c0_9 = arith.constant 0 : index
    %12 = vector.load %arg4[%c0_8, %c0_9] : memref<40x128xf32, #tpu.memory_space<vmem>>, vector<40x128xf32>
    tpu.vector_store %arg4[%c0_8, %c0_9], %11 {strides = array<i32>} : memref<40x128xf32, #tpu.memory_space<vmem>>, vector<40x128xf32>,
    return
  }
  func.func @transform_0(%arg0: i32) -> (i32, i32) {
    %c0_i32 = arith.constant 0 : i32
    %c0_i32_0 = arith.constant 0 : i32
    return %arg0, %c0_i32 : i32, i32
  }
  func.func @transform_1(%arg0: i32) -> (i32, i32) {
    %c0_i32 = arith.constant 0 : i32
    %c0_i32_0 = arith.constant 0 : i32
    %c0_i32_1 = arith.constant 0 : i32
    return %c0_i32, %c0_i32_0 : i32, i32
  }
  func.func @transform_2(%arg0: i32) -> (i32, i32) {
    %c0_i32 = arith.constant 0 : i32
    %c0_i32_0 = arith.constant 0 : i32
    %c0_i32_1 = arith.constant 0 : i32
    return %c0_i32, %c0_i32_0 : i32, i32
  }
  func.func @transform_3(%arg0: i32) -> (i32, i32) {
    %c0_i32 = arith.constant 0 : i32
    %c0_i32_0 = arith.constant 0 : i32
    return %arg0, %c0_i32 : i32, i32
  }
}

</mosaic_0001>

<bundles_post_ra>
// kernel: tpu_custom_call.1
= control target key start
LH: loop header
LB: loop body
LE: loop exit
PB: predicated region body
PF: predicated region fallthrough
CT: control target
= control target key end

     0   :  { %8 = vsyncpa [#allocation3], 0  ;;  %s954_s0 = inlined_call_operand.hbm [shape: f32[40,256], index: 0, kind: input, shape index: {}]   ;;  %s955_s1 = inlined_call_operand.hbm [shape: f32[256,512], index: 1, kind: input, shape index: {}]   ;;  %s956_s2 = inlined_call_operand.hbm [shape: f32[512,128], index: 2, kind: input, shape index: {}]   ;;  %s957_s3 = inlined_call_operand.hbm [shape: f32[40,128], index: 3, kind: output, shape index: {}]  }
   0x1   :  { %9 = vsyncpa [#allocation6], 0  ;;  %s28_s14 = sshll.u32 %s955_s1, 4  ;;  %s29_s14 = int_to_ptr.hbm [resolvable:$true] %s28_s14 }
   0x2   :  { %10 = vsyncpa [#allocation4], 0  ;;  %s845_s15 = smov [#allocation5]   ;;  %s15_s19 = sshll.u32 %s954_s0, 4  ;;  %s16_s19 = int_to_ptr.hbm [resolvable:$true] %s15_s19 }
   0x3   :  { %s30_s16 = sshll.u32 %s845_s15, 4  ;;  %s846_s20 = smov 512   ;;  %s31_s16 = int_to_ptr.vmem [resolvable:$true] %s30_s16 }
   0x4   :  { %s847_s21 = smov 32   ;;  %s848_s22 = smov [#allocation2]  }
   0x5   :  { %36 = dma.hbm_to_vmem [thread:$0]  %s29_s14, 16384, %s31_s16, [#allocation6], %s846_s20, %s846_s20, %s847_s21  }
   0x6   :  { %s17_s23 = sshll.u32 %s848_s22, 4  ;;  %s849_s24 = smov 256   ;;  %s18_s23 = int_to_ptr.vmem [resolvable:$true] %s17_s23 }
   0x7   :  { %s850_s25 = smov 16   ;;  %s41_s27 = sshll.u32 %s956_s2, 4  ;;  %s42_s27 = int_to_ptr.hbm [resolvable:$true] %s41_s27 }
   0x8   :  { %23 = dma.hbm_to_vmem [thread:$0]  %s16_s19, 1280, %s18_s23, [#allocation3], %s849_s24, %s849_s24, %s850_s25  }
   0x9   :  { %s851_s28 = smov [#allocation7]   ;;  %s852_s30 = smov 128  }
   0xa   :  { %s43_s29 = sshll.u32 %s851_s28, 4  ;;  %s853_s0 = smov 8   ;;  %s44_s29 = int_to_ptr.vmem [resolvable:$true] %s43_s29 }
   0xb   :  { %49 = dma.hbm_to_vmem [thread:$0]  %s42_s27, 8192, %s44_s29, [#allocation6], %s852_s30, %s852_s30, %s853_s0  }
   0xc   :  { %839 = dma.done.wait [#allocation3], 1280  }
   0xd   :  { %840 = vsyncadd [#allocation3], 4294966016 }
   0xe   :  { %841 = dma.done.wait [#allocation6], 24576  }
   0xf   :  { %842 = vsyncadd [#allocation6], 4294942720  ;;  %v132_v0 = vld [vmem:[#allocation5 + $0x1e0] sm:$0xff]  ;;  %v133_v2 = vld [vmem:[#allocation5 + $0x1e8] sm:$0xff]  ;;  %s855_s2 = smov [#allocation8]   ;;  %s706_s7 = sshll.u32 %s957_s3, 4  ;;  %s707_s7 = int_to_ptr.hbm [resolvable:$true] %s706_s7 }
  0x10   :  { %v196_v1 = vld [vmem:[#allocation5 + $0x3e0] sm:$0xff]  ;;  %200 = vmatpush.msra.mxu0 %v132_v0  ;;  %v197_v3 = vld [vmem:[#allocation5 + $0x3e8] sm:$0xff]  ;;  %264 = vmatpush.msra.mxu2 %v133_v2  ;;  %v888_v0 = vld [vmem:[#allocation2] sm:$0xff]  ;;  %s704_s4 = sshll.u32 %s855_s2, 4  ;;  %s705_s4 = int_to_ptr.vmem [resolvable:$true] %s704_s4 }
  0x11   :  { %232 = vmatpush.msra.mxu1 %v196_v1  ;;  %v128_v4 = vld [vmem:[#allocation5 + $0x1c0] sm:$0xff]  ;;  %296 = vmatpush.msra.mxu3 %v197_v3  ;;  %v129_v6 = vld [vmem:[#allocation5 + $0x1c8] sm:$0xff]  ;;  %v890_v1 = vld [vmem:[#allocation2 + $0x8] sm:$0xff] }
  0x12   :  { %v192_v5 = vld [vmem:[#allocation5 + $0x3c0] sm:$0xff]  ;;  %v193_v7 = vld [vmem:[#allocation5 + $0x3c8] sm:$0xff]  ;;  %201 = vmatpush.msra.mxu0 %v128_v4  ;;  %265 = vmatpush.msra.mxu2 %v129_v6  ;;  %v135_v2 = vld [vmem:[#allocation5 + $0x1f8] sm:$0xff] }
  0x13   :  { %v124_v8 = vld [vmem:[#allocation5 + $0x1a0] sm:$0xff]  ;;  %233 = vmatpush.msra.mxu1 %v192_v5  ;;  %v125_v10 = vld [vmem:[#allocation5 + $0x1a8] sm:$0xff]  ;;  %297 = vmatpush.msra.mxu3 %v193_v7  ;;  %v199_v3 = vld [vmem:[#allocation5 + $0x3f8] sm:$0xff] }
  0x14   :  { %v188_v9 = vld [vmem:[#allocation5 + $0x3a0] sm:$0xff]  ;;  %v189_v11 = vld [vmem:[#allocation5 + $0x3a8] sm:$0xff]  ;;  %202 = vmatpush.msra.mxu0 %v124_v8  ;;  %266 = vmatpush.msra.mxu2 %v125_v10  ;;  %v134_v4 = vld [vmem:[#allocation5 + $0x1f0] sm:$0xff] }
  0x15   :  { %v120_v12 = vld [vmem:[#allocation5 + $0x180] sm:$0xff]  ;;  %234 = vmatpush.msra.mxu1 %v188_v9  ;;  %v121_v14 = vld [vmem:[#allocation5 + $0x188] sm:$0xff]  ;;  %298 = vmatpush.msra.mxu3 %v189_v11  ;;  %v198_v5 = vld [vmem:[#allocation5 + $0x3f0] sm:$0xff] }
  0x16   :  { %v184_v13 = vld [vmem:[#allocation5 + $0x380] sm:$0xff]  ;;  %v185_v15 = vld [vmem:[#allocation5 + $0x388] sm:$0xff]  ;;  %203 = vmatpush.msra.mxu0 %v120_v12  ;;  %267 = vmatpush.msra.mxu2 %v121_v14  ;;  %v131_v6 = vld [vmem:[#allocation5 + $0x1d8] sm:$0xff] }
  0x17   :  { %v116_v16 = vld [vmem:[#allocation5 + $0x160] sm:$0xff]  ;;  %235 = vmatpush.msra.mxu1 %v184_v13  ;;  %v117_v18 = vld [vmem:[#allocation5 + $0x168] sm:$0xff]  ;;  %299 = vmatpush.msra.mxu3 %v185_v15  ;;  %v195_v7 = vld [vmem:[#allocation5 + $0x3d8] sm:$0xff] }
  0x18   :  { %v180_v17 = vld [vmem:[#allocation5 + $0x360] sm:$0xff]  ;;  %v181_v19 = vld [vmem:[#allocation5 + $0x368] sm:$0xff]  ;;  %204 = vmatpush.msra.mxu0 %v116_v16  ;;  %268 = vmatpush.msra.mxu2 %v117_v18  ;;  %v130_v8 = vld [vmem:[#allocation5 + $0x1d0] sm:$0xff] }
  0x19   :  { %v112_v20 = vld [vmem:[#allocation5 + $0x140] sm:$0xff]  ;;  %236 = vmatpush.msra.mxu1 %v180_v17  ;;  %v113_v22 = vld [vmem:[#allocation5 + $0x148] sm:$0xff]  ;;  %300 = vmatpush.msra.mxu3 %v181_v19  ;;  %v194_v9 = vld [vmem:[#allocation5 + $0x3d0] sm:$0xff] }
  0x1a   :  { %v176_v21 = vld [vmem:[#allocation5 + $0x340] sm:$0xff]  ;;  %v177_v23 = vld [vmem:[#allocation5 + $0x348] sm:$0xff]  ;;  %205 = vmatpush.msra.mxu0 %v112_v20  ;;  %269 = vmatpush.msra.mxu2 %v113_v22  ;;  %v127_v10 = vld [vmem:[#allocation5 + $0x1b8] sm:$0xff] }
  0x1b   :  { %v108_v24 = vld [vmem:[#allocation5 + $0x120] sm:$0xff]  ;;  %237 = vmatpush.msra.mxu1 %v176_v21  ;;  %v109_v26 = vld [vmem:[#allocation5 + $0x128] sm:$0xff]  ;;  %301 = vmatpush.msra.mxu3 %v177_v23  ;;  %v191_v11 = vld [vmem:[#allocation5 + $0x3b8] sm:$0xff] }
  0x1c   :  { %v172_v25 = vld [vmem:[#allocation5 + $0x320] sm:$0xff]  ;;  %v173_v27 = vld [vmem:[#allocation5 + $0x328] sm:$0xff]  ;;  %206 = vmatpush.msra.mxu0 %v108_v24  ;;  %270 = vmatpush.msra.mxu2 %v109_v26  ;;  %v126_v12 = vld [vmem:[#allocation5 + $0x1b0] sm:$0xff] }
  0x1d   :  { %v104_v28 = vld [vmem:[#allocation5 + $0x100] sm:$0xff]  ;;  %238 = vmatpush.msra.mxu1 %v172_v25  ;;  %v105_v30 = vld [vmem:[#allocation5 + $0x108] sm:$0xff]  ;;  %302 = vmatpush.msra.mxu3 %v173_v27  ;;  %v190_v13 = vld [vmem:[#allocation5 + $0x3b0] sm:$0xff] }
  0x1e   :  { %v168_v29 = vld [vmem:[#allocation5 + $0x300] sm:$0xff]  ;;  %v169_v31 = vld [vmem:[#allocation5 + $0x308] sm:$0xff]  ;;  %207 = vmatpush.msra.mxu0 %v104_v28  ;;  %271 = vmatpush.msra.mxu2 %v105_v30  ;;  %v123_v16 = vld [vmem:[#allocation5 + $0x198] sm:$0xff] }
  0x1f   :  { %v100_v32 = vld [vmem:[#allocation5 + $0xe0] sm:$0xff]  ;;  %239 = vmatpush.msra.mxu1 %v168_v29  ;;  %v101_v34 = vld [vmem:[#allocation5 + $0xe8] sm:$0xff]  ;;  %303 = vmatpush.msra.mxu3 %v169_v31  ;;  %v187_v17 = vld [vmem:[#allocation5 + $0x398] sm:$0xff] }
  0x20   :  { %v164_v33 = vld [vmem:[#allocation5 + $0x2e0] sm:$0xff]  ;;  %v165_v35 = vld [vmem:[#allocation5 + $0x2e8] sm:$0xff]  ;;  %208 = vmatpush.msra.mxu0 %v100_v32  ;;  %272 = vmatpush.msra.mxu2 %v101_v34  ;;  %v122_v18 = vld [vmem:[#allocation5 + $0x190] sm:$0xff] }
  0x21   :  { %v96_v36 = vld [vmem:[#allocation5 + $0xc0] sm:$0xff]  ;;  %240 = vmatpush.msra.mxu1 %v164_v33  ;;  %v97_v38 = vld [vmem:[#allocation5 + $0xc8] sm:$0xff]  ;;  %304 = vmatpush.msra.mxu3 %v165_v35  ;;  %v186_v19 = vld [vmem:[#allocation5 + $0x390] sm:$0xff] }
  0x22   :  { %v160_v37 = vld [vmem:[#allocation5 + $0x2c0] sm:$0xff]  ;;  %v161_v39 = vld [vmem:[#allocation5 + $0x2c8] sm:$0xff]  ;;  %209 = vmatpush.msra.mxu0 %v96_v36  ;;  %273 = vmatpush.msra.mxu2 %v97_v38  ;;  %v119_v20 = vld [vmem:[#allocation5 + $0x178] sm:$0xff] }
  0x23   :  { %v92_v40 = vld [vmem:[#allocation5 + $0xa0] sm:$0xff]  ;;  %241 = vmatpush.msra.mxu1 %v160_v37  ;;  %v93_v42 = vld [vmem:[#allocation5 + $0xa8] sm:$0xff]  ;;  %305 = vmatpush.msra.mxu3 %v161_v39  ;;  %v183_v21 = vld [vmem:[#allocation5 + $0x378] sm:$0xff] }
  0x24   :  { %v156_v41 = vld [vmem:[#allocation5 + $0x2a0] sm:$0xff]  ;;  %v157_v43 = vld [vmem:[#allocation5 + $0x2a8] sm:$0xff]  ;;  %210 = vmatpush.msra.mxu0 %v92_v40  ;;  %274 = vmatpush.msra.mxu2 %v93_v42  ;;  %v118_v22 = vld [vmem:[#allocation5 + $0x170] sm:$0xff] }
  0x25   :  { %v88_v44 = vld [vmem:[#allocation5 + $0x80] sm:$0xff]  ;;  %242 = vmatpush.msra.mxu1 %v156_v41  ;;  %v89_v46 = vld [vmem:[#allocation5 + $0x88] sm:$0xff]  ;;  %306 = vmatpush.msra.mxu3 %v157_v43  ;;  %v182_v23 = vld [vmem:[#allocation5 + $0x370] sm:$0xff] }
  0x26   :  { %v152_v45 = vld [vmem:[#allocation5 + $0x280] sm:$0xff]  ;;  %v153_v47 = vld [vmem:[#allocation5 + $0x288] sm:$0xff]  ;;  %211 = vmatpush.msra.mxu0 %v88_v44  ;;  %275 = vmatpush.msra.mxu2 %v89_v46  ;;  %v115_v24 = vld [vmem:[#allocation5 + $0x158] sm:$0xff] }
  0x27   :  { %v84_v48 = vld [vmem:[#allocation5 + $0x60] sm:$0xff]  ;;  %243 = vmatpush.msra.mxu1 %v152_v45  ;;  %v85_v50 = vld [vmem:[#allocation5 + $0x68] sm:$0xff]  ;;  %307 = vmatpush.msra.mxu3 %v153_v47  ;;  %v179_v25 = vld [vmem:[#allocation5 + $0x358] sm:$0xff] }
  0x28   :  { %v148_v49 = vld [vmem:[#allocation5 + $0x260] sm:$0xff]  ;;  %v149_v51 = vld [vmem:[#allocation5 + $0x268] sm:$0xff]  ;;  %212 = vmatpush.msra.mxu0 %v84_v48  ;;  %276 = vmatpush.msra.mxu2 %v85_v50  ;;  %v114_v26 = vld [vmem:[#allocation5 + $0x150] sm:$0xff] }
  0x29   :  { %v80_v52 = vld [vmem:[#allocation5 + $0x40] sm:$0xff]  ;;  %244 = vmatpush.msra.mxu1 %v148_v49  ;;  %v81_v54 = vld [vmem:[#allocation5 + $0x48] sm:$0xff]  ;;  %308 = vmatpush.msra.mxu3 %v149_v51  ;;  %v178_v27 = vld [vmem:[#allocation5 + $0x350] sm:$0xff] }
  0x2a   :  { %v144_v53 = vld [vmem:[#allocation5 + $0x240] sm:$0xff]  ;;  %v145_v55 = vld [vmem:[#allocation5 + $0x248] sm:$0xff]  ;;  %213 = vmatpush.msra.mxu0 %v80_v52  ;;  %277 = vmatpush.msra.mxu2 %v81_v54  ;;  %v111_v28 = vld [vmem:[#allocation5 + $0x138] sm:$0xff] }
  0x2b   :  { %v76_v56 = vld [vmem:[#allocation5 + $0x20] sm:$0xff]  ;;  %245 = vmatpush.msra.mxu1 %v144_v53  ;;  %v77_v58 = vld [vmem:[#allocation5 + $0x28] sm:$0xff]  ;;  %309 = vmatpush.msra.mxu3 %v145_v55  ;;  %v175_v29 = vld [vmem:[#allocation5 + $0x338] sm:$0xff] }
  0x2c   :  { %v140_v57 = vld [vmem:[#allocation5 + $0x220] sm:$0xff]  ;;  %v141_v59 = vld [vmem:[#allocation5 + $0x228] sm:$0xff]  ;;  %214 = vmatpush.msra.mxu0 %v76_v56  ;;  %278 = vmatpush.msra.mxu2 %v77_v58  ;;  %v904_v30 = vld [vmem:[#allocation2 + $0x20] sm:$0xff] }
  0x2d   :  { %v72_v60 = vld [vmem:[#allocation5] sm:$0xff]  ;;  %246 = vmatpush.msra.mxu1 %v140_v57  ;;  %v73_v62 = vld [vmem:[#allocation5 + $0x8] sm:$0xff]  ;;  %310 = vmatpush.msra.mxu3 %v141_v59  ;;  %v906_v31 = vld [vmem:[#allocation2 + $0x28] sm:$0xff] }
  0x2e   :  { %v136_v61 = vld [vmem:[#allocation5 + $0x200] sm:$0xff]  ;;  %v137_v63 = vld [vmem:[#allocation5 + $0x208] sm:$0xff]  ;;  %215 = vmatpush.msra.mxu0 %v72_v60  ;;  %279 = vmatpush.msra.mxu2 %v73_v62  ;;  %v107_v32 = vld [vmem:[#allocation5 + $0x118] sm:$0xff] }
  0x2f   :  { %247 = vmatpush.msra.mxu1 %v136_v61  ;;  %311 = vmatpush.msra.mxu3 %v137_v63  ;;  %v896_v14 = vld [vmem:[#allocation2 + $0x10] sm:$0xff]  ;;  %v898_v15 = vld [vmem:[#allocation2 + $0x18] sm:$0xff]  ;;  %v171_v33 = vld [vmem:[#allocation5 + $0x318] sm:$0xff] }
  0x30   :  { %216 = vmatmul.f32.vlgmr.msra.gmra.mxu0 %v888_v0  ;;  %248 = vmatmul.f32.vlgmr.msra.gmra.mxu1 %v890_v1  ;;  %v110_v34 = vld [vmem:[#allocation5 + $0x130] sm:$0xff]  ;;  %v103_v36 = vld [vmem:[#allocation5 + $0xf8] sm:$0xff]  ;;  %v912_v44 = vld [vmem:[#allocation2 + $0x30] sm:$0xff] }
  0x31   :  { %280 = vmatmul.f32.vlgmr.msra.gmra.mxu2 %v888_v0  ;;  %312 = vmatmul.f32.vlgmr.msra.gmra.mxu3 %v890_v1  ;;  %v174_v35 = vld [vmem:[#allocation5 + $0x330] sm:$0xff]  ;;  %v167_v37 = vld [vmem:[#allocation5 + $0x2f8] sm:$0xff]  ;;  %v914_v45 = vld [vmem:[#allocation2 + $0x38] sm:$0xff] }
  0x32   :  { %392 = vmatpush.msrb.mxu2 %v135_v2  ;;  %424 = vmatpush.msrb.mxu3 %v199_v3  ;;  %v106_v38 = vld [vmem:[#allocation5 + $0x110] sm:$0xff]  ;;  %v99_v40 = vld [vmem:[#allocation5 + $0xd8] sm:$0xff] }
  0x33   :  { %328 = vmatpush.msrb.mxu0 %v134_v4  ;;  %360 = vmatpush.msrb.mxu1 %v198_v5  ;;  %v170_v39 = vld [vmem:[#allocation5 + $0x310] sm:$0xff]  ;;  %v163_v41 = vld [vmem:[#allocation5 + $0x2d8] sm:$0xff] }
  0x34   :  { %393 = vmatpush.msrb.mxu2 %v131_v6  ;;  %425 = vmatpush.msrb.mxu3 %v195_v7  ;;  %v102_v42 = vld [vmem:[#allocation5 + $0xf0] sm:$0xff]  ;;  %v95_v46 = vld [vmem:[#allocation5 + $0xb8] sm:$0xff] }
  0x35   :  { %329 = vmatpush.msrb.mxu0 %v130_v8  ;;  %361 = vmatpush.msrb.mxu1 %v194_v9  ;;  %v166_v43 = vld [vmem:[#allocation5 + $0x2f0] sm:$0xff]  ;;  %v159_v47 = vld [vmem:[#allocation5 + $0x2b8] sm:$0xff] }
  0x36   :  { %394 = vmatpush.msrb.mxu2 %v127_v10  ;;  %426 = vmatpush.msrb.mxu3 %v191_v11  ;;  %v98_v48 = vld [vmem:[#allocation5 + $0xd0] sm:$0xff]  ;;  %v91_v50 = vld [vmem:[#allocation5 + $0x98] sm:$0xff] }
  0x37   :  { %330 = vmatpush.msrb.mxu0 %v126_v12  ;;  %362 = vmatpush.msrb.mxu1 %v190_v13  ;;  %v162_v49 = vld [vmem:[#allocation5 + $0x2d0] sm:$0xff]  ;;  %v155_v51 = vld [vmem:[#allocation5 + $0x298] sm:$0xff] }
  0x38   :  { %219 = vmatmul.f32.gmra.mxu0 %v896_v14  ;;  %251 = vmatmul.f32.gmra.mxu1 %v898_v15  ;;  %v94_v52 = vld [vmem:[#allocation5 + $0xb0] sm:$0xff]  ;;  %v87_v54 = vld [vmem:[#allocation5 + $0x78] sm:$0xff] }
  0x39   :  { %283 = vmatmul.f32.gmra.mxu2 %v896_v14  ;;  %315 = vmatmul.f32.gmra.mxu3 %v898_v15  ;;  %v158_v53 = vld [vmem:[#allocation5 + $0x2b0] sm:$0xff]  ;;  %v151_v55 = vld [vmem:[#allocation5 + $0x278] sm:$0xff] }
  0x3a   :  { %395 = vmatpush.msrb.mxu2 %v123_v16  ;;  %427 = vmatpush.msrb.mxu3 %v187_v17  ;;  %v90_v56 = vld [vmem:[#allocation5 + $0x90] sm:$0xff]  ;;  %v922_v59 = vld [vmem:[#allocation2 + $0x48] sm:$0xff] }
  0x3b   :  { %331 = vmatpush.msrb.mxu0 %v122_v18  ;;  %363 = vmatpush.msrb.mxu1 %v186_v19  ;;  %v154_v57 = vld [vmem:[#allocation5 + $0x290] sm:$0xff]  ;;  %v83_v62 = vld [vmem:[#allocation5 + $0x58] sm:$0xff]  ;;  %v489_v18 = vld [vmem:[#allocation7 + $0x68] sm:$0xff] }
  0x3c   :  { %396 = vmatpush.msrb.mxu2 %v119_v20  ;;  %428 = vmatpush.msrb.mxu3 %v183_v21  ;;  %v920_v58 = vld [vmem:[#allocation2 + $0x40] sm:$0xff]  ;;  %v147_v63 = vld [vmem:[#allocation5 + $0x258] sm:$0xff]  ;;  %v505_v19 = vld [vmem:[#allocation7 + $0xe8] sm:$0xff] }
  0x3d   :  { %332 = vmatpush.msrb.mxu0 %v118_v22  ;;  %364 = vmatpush.msrb.mxu1 %v182_v23  ;;  %v86_v60 = vld [vmem:[#allocation5 + $0x70] sm:$0xff]  ;;  %v79_v4 = vld [vmem:[#allocation5 + $0x38] sm:$0xff]  ;;  %v488_v20 = vld [vmem:[#allocation7 + $0x60] sm:$0xff] }
  0x3e   :  { %397 = vmatpush.msrb.mxu2 %v115_v24  ;;  %429 = vmatpush.msrb.mxu3 %v179_v25  ;;  %v150_v61 = vld [vmem:[#allocation5 + $0x270] sm:$0xff]  ;;  %v143_v5 = vld [vmem:[#allocation5 + $0x238] sm:$0xff]  ;;  %v504_v21 = vld [vmem:[#allocation7 + $0xe0] sm:$0xff] }
  0x3f   :  { %333 = vmatpush.msrb.mxu0 %v114_v26  ;;  %365 = vmatpush.msrb.mxu1 %v178_v27  ;;  %v82_v2 = vld [vmem:[#allocation5 + $0x50] sm:$0xff]  ;;  %v75_v8 = vld [vmem:[#allocation5 + $0x18] sm:$0xff]  ;;  %v485_v24 = vld [vmem:[#allocation7 + $0x48] sm:$0xff] }
  0x40   :  { %398 = vmatpush.msrb.mxu2 %v111_v28  ;;  %430 = vmatpush.msrb.mxu3 %v175_v29  ;;  %v146_v3 = vld [vmem:[#allocation5 + $0x250] sm:$0xff]  ;;  %v139_v9 = vld [vmem:[#allocation5 + $0x218] sm:$0xff]  ;;  %v501_v25 = vld [vmem:[#allocation7 + $0xc8] sm:$0xff] }
  0x41   :  { %222 = vmatmul.f32.gmra.mxu0 %v904_v30  ;;  %254 = vmatmul.f32.gmra.mxu1 %v906_v31  ;;  %v78_v6 = vld [vmem:[#allocation5 + $0x30] sm:$0xff]  ;;  %v491_v12 = vld [vmem:[#allocation7 + $0x78] sm:$0xff] }
  0x42   :  { %286 = vmatmul.f32.gmra.mxu2 %v904_v30  ;;  %318 = vmatmul.f32.gmra.mxu3 %v906_v31  ;;  %v142_v7 = vld [vmem:[#allocation5 + $0x230] sm:$0xff]  ;;  %v507_v16 = vld [vmem:[#allocation7 + $0xf8] sm:$0xff] }
  0x43   :  { %399 = vmatpush.msrb.mxu2 %v107_v32  ;;  %431 = vmatpush.msrb.mxu3 %v171_v33  ;;  %v74_v10 = vld [vmem:[#allocation5 + $0x10] sm:$0xff]  ;;  %v483_v26 = vld [vmem:[#allocation7 + $0x38] sm:$0xff]  ;;  %v497_v32 = vld [vmem:[#allocation7 + $0xa8] sm:$0xff] }
  0x44   :  { %334 = vmatpush.msrb.mxu0 %v110_v34  ;;  %366 = vmatpush.msrb.mxu1 %v174_v35  ;;  %v138_v11 = vld [vmem:[#allocation5 + $0x210] sm:$0xff]  ;;  %v499_v27 = vld [vmem:[#allocation7 + $0xb8] sm:$0xff]  ;;  %v496_v34 = vld [vmem:[#allocation7 + $0xa0] sm:$0xff] }
  0x45   :  { %400 = vmatpush.msrb.mxu2 %v103_v36  ;;  %432 = vmatpush.msrb.mxu3 %v167_v37  ;;  %v490_v13 = vld [vmem:[#allocation7 + $0x70] sm:$0xff]  ;;  %v479_v33 = vld [vmem:[#allocation7 + $0x18] sm:$0xff]  ;;  %v477_v37 = vld [vmem:[#allocation7 + $0x8] sm:$0xff] }
  0x46   :  { %335 = vmatpush.msrb.mxu0 %v106_v38  ;;  %367 = vmatpush.msrb.mxu1 %v170_v39  ;;  %v506_v17 = vld [vmem:[#allocation7 + $0xf0] sm:$0xff]  ;;  %v495_v36 = vld [vmem:[#allocation7 + $0x98] sm:$0xff]  ;;  %v476_v39 = vld [vmem:[#allocation7] sm:$0xff] }
  0x47   :  { %401 = vmatpush.msrb.mxu2 %v99_v40  ;;  %433 = vmatpush.msrb.mxu3 %v163_v41  ;;  %v486_v22 = vld [vmem:[#allocation7 + $0x50] sm:$0xff]  ;;  %v493_v40 = vld [vmem:[#allocation7 + $0x88] sm:$0xff]  ;;  %v523_v41 = vld [vmem:[#allocation7 + $0x178] sm:$0xff] }
  0x48   :  { %336 = vmatpush.msrb.mxu0 %v102_v42  ;;  %368 = vmatpush.msrb.mxu1 %v166_v43  ;;  %v502_v23 = vld [vmem:[#allocation7 + $0xd0] sm:$0xff]  ;;  %v492_v42 = vld [vmem:[#allocation7 + $0x80] sm:$0xff]  ;;  %v539_v43 = vld [vmem:[#allocation7 + $0x1f8] sm:$0xff] }
  0x49   :  { %225 = vmatmul.f32.gmra.mxu0 %v912_v44  ;;  %257 = vmatmul.f32.gmra.mxu1 %v914_v45  ;;  %v482_v28 = vld [vmem:[#allocation7 + $0x30] sm:$0xff] }
  0x4a   :  { %289 = vmatmul.f32.gmra.mxu2 %v912_v44  ;;  %321 = vmatmul.f32.gmra.mxu3 %v914_v45  ;;  %v498_v29 = vld [vmem:[#allocation7 + $0xb0] sm:$0xff] }
  0x4b   :  { %402 = vmatpush.msrb.mxu2 %v95_v46  ;;  %434 = vmatpush.msrb.mxu3 %v159_v47  ;;  %v478_v35 = vld [vmem:[#allocation7 + $0x10] sm:$0xff]  ;;  %v537_v47 = vld [vmem:[#allocation7 + $0x1e8] sm:$0xff] }
  0x4c   :  { %337 = vmatpush.msrb.mxu0 %v98_v48  ;;  %369 = vmatpush.msrb.mxu1 %v162_v49  ;;  %v494_v38 = vld [vmem:[#allocation7 + $0x90] sm:$0xff]  ;;  %v520_v48 = vld [vmem:[#allocation7 + $0x160] sm:$0xff]  ;;  %v519_v49 = vld [vmem:[#allocation7 + $0x158] sm:$0xff] }
  0x4d   :  { %403 = vmatpush.msrb.mxu2 %v91_v50  ;;  %435 = vmatpush.msrb.mxu3 %v155_v51  ;;  %v538_v46 = vld [vmem:[#allocation7 + $0x1f0] sm:$0xff]  ;;  %v536_v50 = vld [vmem:[#allocation7 + $0x1e0] sm:$0xff]  ;;  %v535_v51 = vld [vmem:[#allocation7 + $0x1d8] sm:$0xff] }
  0x4e   :  { %338 = vmatpush.msrb.mxu0 %v94_v52  ;;  %370 = vmatpush.msrb.mxu1 %v158_v53  ;;  %v518_v52 = vld [vmem:[#allocation7 + $0x150] sm:$0xff]  ;;  %v517_v53 = vld [vmem:[#allocation7 + $0x148] sm:$0xff] }
  0x4f   :  { %404 = vmatpush.msrb.mxu2 %v87_v54  ;;  %436 = vmatpush.msrb.mxu3 %v151_v55  ;;  %v534_v54 = vld [vmem:[#allocation7 + $0x1d0] sm:$0xff]  ;;  %v533_v55 = vld [vmem:[#allocation7 + $0x1c8] sm:$0xff] }
  0x50   :  { %339 = vmatpush.msrb.mxu0 %v90_v56  ;;  %371 = vmatpush.msrb.mxu1 %v154_v57  ;;  %v516_v56 = vld [vmem:[#allocation7 + $0x140] sm:$0xff]  ;;  %v515_v57 = vld [vmem:[#allocation7 + $0x138] sm:$0xff] }
  0x51   :  { %228 = vmatmul.f32.gmra.mxu0 %v920_v58  ;;  %260 = vmatmul.f32.gmra.mxu1 %v922_v59 }
  0x52   :  { %292 = vmatmul.f32.gmra.mxu2 %v920_v58  ;;  %324 = vmatmul.f32.gmra.mxu3 %v922_v59 }
  0x53   :  { %340 = vmatpush.msrb.mxu0 %v86_v60  ;;  %372 = vmatpush.msrb.mxu1 %v150_v61 }
  0x54   :  { %405 = vmatpush.msrb.mxu2 %v83_v62  ;;  %437 = vmatpush.msrb.mxu3 %v147_v63  ;;  %v514_v62 = vld [vmem:[#allocation7 + $0x130] sm:$0xff] }
  0x55   :  { %341 = vmatpush.msrb.mxu0 %v82_v2  ;;  %373 = vmatpush.msrb.mxu1 %v146_v3  ;;  %v531_v2 = vld [vmem:[#allocation7 + $0x1b8] sm:$0xff]  ;;  %v513_v3 = vld [vmem:[#allocation7 + $0x128] sm:$0xff] }
  0x56   :  { %406 = vmatpush.msrb.mxu2 %v79_v4  ;;  %438 = vmatpush.msrb.mxu3 %v143_v5  ;;  %v530_v4 = vld [vmem:[#allocation7 + $0x1b0] sm:$0xff]  ;;  %v512_v5 = vld [vmem:[#allocation7 + $0x120] sm:$0xff] }
  0x57   :  { %342 = vmatpush.msrb.mxu0 %v78_v6  ;;  %374 = vmatpush.msrb.mxu1 %v142_v7  ;;  %v529_v6 = vld [vmem:[#allocation7 + $0x1a8] sm:$0xff] }
  0x58   :  { %407 = vmatpush.msrb.mxu2 %v75_v8  ;;  %439 = vmatpush.msrb.mxu3 %v139_v9 }
  0x59   :  { %343 = vmatpush.msrb.mxu0 %v74_v10  ;;  %375 = vmatpush.msrb.mxu1 %v138_v11 }
  0x5a   :  { %344 = vmatmul.f32.vlgmr.msrb.gmra.mxu0 %v888_v0  ;;  %376 = vmatmul.f32.vlgmr.msrb.gmra.mxu1 %v890_v1 }
  0x5b   :  { %408 = vmatmul.f32.vlgmr.msrb.gmra.mxu2 %v888_v0  ;;  %440 = vmatmul.f32.vlgmr.msrb.gmra.mxu3 %v890_v1  ;;  %v487_v0 = vld [vmem:[#allocation7 + $0x58] sm:$0xff] }
  0x5c   :  { %540 = vmatpush.msra.mxu0 %v491_v12  ;;  %572 = vmatpush.msra.mxu1 %v507_v16  ;;  %v503_v1 = vld [vmem:[#allocation7 + $0xd8] sm:$0xff] }
  0x5d   :  { %604 = vmatpush.msra.mxu2 %v523_v41  ;;  %636 = vmatpush.msra.mxu3 %v539_v43  ;;  %v511_v12 = vld [vmem:[#allocation7 + $0x118] sm:$0xff] }
  0x5e   :  { %541 = vmatpush.msra.mxu0 %v490_v13  ;;  %573 = vmatpush.msra.mxu1 %v506_v17  ;;  %v510_v17 = vld [vmem:[#allocation7 + $0x110] sm:$0xff] }
  0x5f   :  { %637 = vmatpush.msra.mxu3 %v538_v46 }
  0x60   :  { %542 = vmatpush.msra.mxu0 %v489_v18  ;;  %574 = vmatpush.msra.mxu1 %v505_v19  ;;  %v528_v19 = vld [vmem:[#allocation7 + $0x1a0] sm:$0xff] }
  0x61   :  { %638 = vmatpush.msra.mxu3 %v537_v47 }
  0x62   :  { %347 = vmatmul.f32.gmra.mxu0 %v896_v14  ;;  %379 = vmatmul.f32.gmra.mxu1 %v898_v15 }
  0x63   :  { %411 = vmatmul.f32.gmra.mxu2 %v896_v14  ;;  %443 = vmatmul.f32.gmra.mxu3 %v898_v15  ;;  %v484_v14 = vld [vmem:[#allocation7 + $0x40] sm:$0xff] }
  0x64   :  { %543 = vmatpush.msra.mxu0 %v488_v20  ;;  %575 = vmatpush.msra.mxu1 %v504_v21  ;;  %v500_v15 = vld [vmem:[#allocation7 + $0xc0] sm:$0xff]  ;;  %v509_v20 = vld [vmem:[#allocation7 + $0x108] sm:$0xff]  ;;  %v527_v21 = vld [vmem:[#allocation7 + $0x198] sm:$0xff] }
  0x65   :  { %639 = vmatpush.msra.mxu3 %v536_v50 }
  0x66   :  { %544 = vmatpush.msra.mxu0 %v487_v0  ;;  %576 = vmatpush.msra.mxu1 %v503_v1  ;;  %v508_v0 = vld [vmem:[#allocation7 + $0x100] sm:$0xff]  ;;  %v526_v1 = vld [vmem:[#allocation7 + $0x190] sm:$0xff] }
  0x67   :  { %640 = vmatpush.msra.mxu3 %v535_v51 }
  0x68   :  { %545 = vmatpush.msra.mxu0 %v486_v22  ;;  %577 = vmatpush.msra.mxu1 %v502_v23 }
  0x69   :  { %641 = vmatpush.msra.mxu3 %v534_v54 }
  0x6a   :  { %350 = vmatmul.f32.gmra.mxu0 %v904_v30  ;;  %382 = vmatmul.f32.gmra.mxu1 %v906_v31 }
  0x6b   :  { %414 = vmatmul.f32.gmra.mxu2 %v904_v30  ;;  %446 = vmatmul.f32.gmra.mxu3 %v906_v31  ;;  %v481_v30 = vld [vmem:[#allocation7 + $0x28] sm:$0xff]  ;;  %v480_v31 = vld [vmem:[#allocation7 + $0x20] sm:$0xff] }
  0x6c   :  { %546 = vmatpush.msra.mxu0 %v485_v24  ;;  %578 = vmatpush.msra.mxu1 %v501_v25 }
  0x6d   :  { %642 = vmatpush.msra.mxu3 %v533_v55 }
  0x6e   :  { %547 = vmatpush.msra.mxu0 %v484_v14  ;;  %579 = vmatpush.msra.mxu1 %v500_v15 }
  0x70   :  { %548 = vmatpush.msra.mxu0 %v483_v26  ;;  %580 = vmatpush.msra.mxu1 %v499_v27  ;;  %v525_v27 = vld [vmem:[#allocation7 + $0x188] sm:$0xff] }
  0x72   :  { %353 = vmatmul.f32.gmra.mxu0 %v912_v44  ;;  %385 = vmatmul.f32.gmra.mxu1 %v914_v45 }
  0x73   :  { %417 = vmatmul.f32.gmra.mxu2 %v912_v44  ;;  %449 = vmatmul.f32.gmra.mxu3 %v914_v45  ;;  %v522_v44 = vld [vmem:[#allocation7 + $0x170] sm:$0xff]  ;;  %v521_v45 = vld [vmem:[#allocation7 + $0x168] sm:$0xff] }
  0x74   :  { %549 = vmatpush.msra.mxu0 %v482_v28  ;;  %581 = vmatpush.msra.mxu1 %v498_v29  ;;  %v524_v29 = vld [vmem:[#allocation7 + $0x180] sm:$0xff] }
  0x75   :  { %605 = vmatpush.msra.mxu2 %v522_v44 }
  0x76   :  { %550 = vmatpush.msra.mxu0 %v481_v30  ;;  %582 = vmatpush.msra.mxu1 %v497_v32 }
  0x77   :  { %606 = vmatpush.msra.mxu2 %v521_v45 }
  0x78   :  { %551 = vmatpush.msra.mxu0 %v480_v31  ;;  %583 = vmatpush.msra.mxu1 %v496_v34 }
  0x79   :  { %607 = vmatpush.msra.mxu2 %v520_v48 }
  0x7a   :  { %356 = vmatmul.f32.gmra.mxu0 %v920_v58  ;;  %388 = vmatmul.f32.gmra.mxu1 %v922_v59 }
  0x7b   :  { %420 = vmatmul.f32.gmra.mxu2 %v920_v58  ;;  %452 = vmatmul.f32.gmra.mxu3 %v922_v59  ;;  %v532_v58 = vld [vmem:[#allocation7 + $0x1c0] sm:$0xff] }
  0x7c   :  { %552 = vmatpush.msra.mxu0 %v479_v33  ;;  %584 = vmatpush.msra.mxu1 %v495_v36 }
  0x7d   :  { %608 = vmatpush.msra.mxu2 %v519_v49  ;;  %643 = vmatpush.msra.mxu3 %v532_v58 }
  0x7e   :  { %553 = vmatpush.msra.mxu0 %v478_v35  ;;  %585 = vmatpush.msra.mxu1 %v494_v38 }
  0x7f   :  { %609 = vmatpush.msra.mxu2 %v518_v52  ;;  %644 = vmatpush.msra.mxu3 %v531_v2 }
  0x80   :  { %554 = vmatpush.msra.mxu0 %v477_v37  ;;  %586 = vmatpush.msra.mxu1 %v493_v40 }
  0x81   :  { %610 = vmatpush.msra.mxu2 %v517_v53  ;;  %645 = vmatpush.msra.mxu3 %v530_v4 }
  0x82   :  { %555 = vmatpush.msra.mxu0 %v476_v39  ;;  %587 = vmatpush.msra.mxu1 %v492_v42 }
  0x83   :  { %611 = vmatpush.msra.mxu2 %v516_v56  ;;  %646 = vmatpush.msra.mxu3 %v529_v6 }
  0x85   :  { %612 = vmatpush.msra.mxu2 %v515_v57  ;;  %647 = vmatpush.msra.mxu3 %v528_v19 }
  0x87   :  { %613 = vmatpush.msra.mxu2 %v514_v62  ;;  %648 = vmatpush.msra.mxu3 %v527_v21 }
  0x89   :  { %614 = vmatpush.msra.mxu2 %v513_v3  ;;  %649 = vmatpush.msra.mxu3 %v526_v1 }
  0x8b   :  { %615 = vmatpush.msra.mxu2 %v512_v5  ;;  %650 = vmatpush.msra.mxu3 %v525_v27  ;;  %v854_v27 = vmov 0.6931472  }
  0x8c   :  { %731 = vrcp.f32 %v854_v27 }
  0x8d   :  { %616 = vmatpush.msra.mxu2 %v511_v12  ;;  %651 = vmatpush.msra.mxu3 %v524_v29 }
  0x8f   :  { %617 = vmatpush.msra.mxu2 %v510_v17 }
  0x91   :  { %618 = vmatpush.msra.mxu2 %v509_v20 }
  0x92   :  { %v732_v29 = vpop.eup %731 }
  0x93   :  { %619 = vmatpush.msra.mxu2 %v508_v0  ;;  %vm688_vm0 = vweird.f32 %v732_v29 }
  0xad   :  { %v217_v59 = vpop.f32.mrf.mxu0  ;;  %v249_v60 = vpop.f32.mrf.mxu1 }
  0xae   :  { %v250_v61 = vadd.f32 %v249_v60, %v217_v59 }
  0xb0   :  { %v456_v63 = vmul.f32 %v250_v61, %v250_v61 }
  0xb2   :  { %556 = vmatmul.f32.vlgmr.msra.gmra.mxu0 %v456_v63 }
  0xb4   :  { %v281_v7 = vpop.f32.mrf.mxu2  ;;  %v313_v8 = vpop.f32.mrf.mxu3 }
  0xb5   :  { %v314_v9 = vadd.f32 %v313_v8, %v281_v7  ;;  %v220_v10 = vpop.f32.mrf.mxu0  ;;  %v252_v11 = vpop.f32.mrf.mxu1 }
  0xb6   :  { %v253_v13 = vadd.f32 %v252_v11, %v220_v10 }
  0xb7   :  { %v457_v16 = vmul.f32 %v314_v9, %v314_v9 }
  0xb8   :  { %v460_v18 = vmul.f32 %v253_v13, %v253_v13 }
  0xb9   :  { %588 = vmatmul.f32.vlgmr.msra.gmra.mxu1 %v457_v16 }
  0xba   :  { %559 = vmatmul.f32.gmra.mxu0 %v460_v18 }
  0xbc   :  { %v284_v22 = vpop.f32.mrf.mxu2  ;;  %v316_v23 = vpop.f32.mrf.mxu3 }
  0xbd   :  { %v317_v24 = vadd.f32 %v316_v23, %v284_v22 }
  0xbe   :  { %v223_v25 = vpop.f32.mrf.mxu0  ;;  %v255_v14 = vpop.f32.mrf.mxu1 }
  0xbf   :  { %v461_v15 = vmul.f32 %v317_v24, %v317_v24  ;;  %v256_v26 = vadd.f32 %v255_v14, %v223_v25 }
  0xc1   :  { %v464_v28 = vmul.f32 %v256_v26, %v256_v26  ;;  %591 = vmatmul.f32.gmra.mxu1 %v461_v15 }
  0xc3   :  { %562 = vmatmul.f32.gmra.mxu0 %v464_v28 }
  0xc5   :  { %v287_v30 = vpop.f32.mrf.mxu2  ;;  %v319_v31 = vpop.f32.mrf.mxu3 }
  0xc6   :  { %v320_v32 = vadd.f32 %v319_v31, %v287_v30  ;;  %v226_v33 = vpop.f32.mrf.mxu0  ;;  %v258_v34 = vpop.f32.mrf.mxu1  ;;  %v684_v31 = vmul.f32 0.6931472, %v732_v29 }
  0xc7   :  { %v259_v35 = vadd.f32 %v258_v34, %v226_v33 }
  0xc8   :  { %v465_v36 = vmul.f32 %v320_v32, %v320_v32 }
  0xc9   :  { %v468_v37 = vmul.f32 %v259_v35, %v259_v35 }
  0xca   :  { %594 = vmatmul.f32.gmra.mxu1 %v465_v36  ;;  %v685_v36 = vsub.f32 1.0, %v684_v31 }
  0xcb   :  { %565 = vmatmul.f32.gmra.mxu0 %v468_v37 }
  0xcd   :  { %v290_v38 = vpop.f32.mrf.mxu2  ;;  %v322_v39 = vpop.f32.mrf.mxu3 }
  0xce   :  { %v323_v40 = vadd.f32 %v322_v39, %v290_v38  ;;  %v229_v41 = vpop.f32.mrf.mxu0  ;;  %v261_v42 = vpop.f32.mrf.mxu1 }
  0xcf   :  { %v262_v43 = vadd.f32 %v261_v42, %v229_v41  ;;  %v686_v41 = vmul.f32 %v732_v29, %v685_v36 }
  0xd0   :  { %v469_v44 = vmul.f32 %v323_v40, %v323_v40 }
  0xd1   :  { %v472_v45 = vmul.f32 %v262_v43, %v262_v43 }
  0xd2   :  { %597 = vmatmul.f32.gmra.mxu1 %v469_v44  ;;  %v687_v44 = vadd.f32 %v732_v29, %v686_v41 }
  0xd3   :  { %568 = vmatmul.f32.gmra.mxu0 %v472_v45 }
  0xd5   :  { %v293_v46 = vpop.f32.mrf.mxu2  ;;  %v325_v47 = vpop.f32.mrf.mxu3 }
  0xd6   :  { %v326_v48 = vadd.f32 %v325_v47, %v293_v46 }
  0xd7   :  { %v345_v49 = vpop.f32.mrf.mxu0  ;;  %v377_v50 = vpop.f32.mrf.mxu1 }
  0xd8   :  { %v473_v51 = vmul.f32 %v326_v48, %v326_v48  ;;  %v378_v52 = vadd.f32 %v377_v50, %v345_v49 }
  0xda   :  { %v458_v53 = vmul.f32 %v378_v52, %v378_v52  ;;  %600 = vmatmul.f32.gmra.mxu1 %v473_v51  ;;  %v689_v51 = vsel %vm688_vm0, %v732_v29, %v687_v44 }
  0xdc   :  { %620 = vmatmul.f32.vlgmr.msra.gmra.mxu2 %v458_v53 }
  0xde   :  { %v409_v54 = vpop.f32.mrf.mxu2  ;;  %v441_v55 = vpop.f32.mrf.mxu3 }
  0xdf   :  { %v442_v56 = vadd.f32 %v441_v55, %v409_v54  ;;  %v348_v57 = vpop.f32.mrf.mxu0  ;;  %v380_v58 = vpop.f32.mrf.mxu1 }
  0xe0   :  { %v381_v59 = vadd.f32 %v380_v58, %v348_v57 }
  0xe1   :  { %v459_v60 = vmul.f32 %v442_v56, %v442_v56 }
  0xe2   :  { %v462_v61 = vmul.f32 %v381_v59, %v381_v59 }
  0xe3   :  { %652 = vmatmul.f32.vlgmr.msra.gmra.mxu3 %v459_v60 }
  0xe4   :  { %623 = vmatmul.f32.gmra.mxu2 %v462_v61 }
  0xe6   :  { %v412_v62 = vpop.f32.mrf.mxu2  ;;  %v444_v63 = vpop.f32.mrf.mxu3 }
  0xe7   :  { %v445_v2 = vadd.f32 %v444_v63, %v412_v62  ;;  %v351_v3 = vpop.f32.mrf.mxu0  ;;  %v383_v4 = vpop.f32.mrf.mxu1 }
  0xe8   :  { %v384_v5 = vadd.f32 %v383_v4, %v351_v3 }
  0xe9   :  { %v463_v6 = vmul.f32 %v445_v2, %v445_v2 }
  0xea   :  { %v466_v7 = vmul.f32 %v384_v5, %v384_v5 }
  0xeb   :  { %655 = vmatmul.f32.gmra.mxu3 %v463_v6 }
  0xec   :  { %626 = vmatmul.f32.gmra.mxu2 %v466_v7 }
  0xee   :  { %v415_v8 = vpop.f32.mrf.mxu2  ;;  %v447_v9 = vpop.f32.mrf.mxu3 }
  0xef   :  { %v448_v10 = vadd.f32 %v447_v9, %v415_v8  ;;  %v354_v11 = vpop.f32.mrf.mxu0  ;;  %v386_v12 = vpop.f32.mrf.mxu1 }
  0xf0   :  { %v387_v13 = vadd.f32 %v386_v12, %v354_v11 }
  0xf1   :  { %v467_v16 = vmul.f32 %v448_v10, %v448_v10 }
  0xf2   :  { %v470_v17 = vmul.f32 %v387_v13, %v387_v13 }
  0xf3   :  { %658 = vmatmul.f32.gmra.mxu3 %v467_v16 }
  0xf4   :  { %629 = vmatmul.f32.gmra.mxu2 %v470_v17 }
  0xf6   :  { %v418_v18 = vpop.f32.mrf.mxu2  ;;  %v450_v19 = vpop.f32.mrf.mxu3 }
  0xf7   :  { %v451_v20 = vadd.f32 %v450_v19, %v418_v18  ;;  %v357_v21 = vpop.f32.mrf.mxu0  ;;  %v389_v0 = vpop.f32.mrf.mxu1 }
  0xf8   :  { %v390_v1 = vadd.f32 %v389_v0, %v357_v21 }
  0xf9   :  { %v471_v22 = vmul.f32 %v451_v20, %v451_v20 }
  0xfa   :  { %v474_v23 = vmul.f32 %v390_v1, %v390_v1 }
  0xfb   :  { %661 = vmatmul.f32.gmra.mxu3 %v471_v22 }
  0xfc   :  { %632 = vmatmul.f32.gmra.mxu2 %v474_v23 }
  0xfe   :  { %v421_v24 = vpop.f32.mrf.mxu2  ;;  %v453_v25 = vpop.f32.mrf.mxu3 }
  0xff   :  { %v454_v14 = vadd.f32 %v453_v25, %v421_v24 }
 0x101   :  { %v475_v15 = vmul.f32 %v454_v14, %v454_v14 }
 0x103   :  { %664 = vmatmul.f32.gmra.mxu3 %v475_v15 }
 0x12f   :  { %v557_v28 = vpop.f32.mrf.mxu0 }
 0x136   :  { %v589_v26 = vpop.f32.mrf.mxu1 }
 0x137   :  { %v590_v33 = vadd.f32 %v589_v26, %v557_v28  ;;  %v560_v34 = vpop.f32.mrf.mxu0 }
 0x13e   :  { %v592_v32 = vpop.f32.mrf.mxu1 }
 0x13f   :  { %v593_v42 = vadd.f32 %v592_v32, %v560_v34 }
 0x140   :  { %v563_v46 = vpop.f32.mrf.mxu0 }
 0x147   :  { %v595_v43 = vpop.f32.mrf.mxu1 }
 0x148   :  { %v596_v54 = vadd.f32 %v595_v43, %v563_v46  ;;  %v566_v60 = vpop.f32.mrf.mxu0 }
 0x14f   :  { %v598_v57 = vpop.f32.mrf.mxu1 }
 0x150   :  { %v599_v3 = vadd.f32 %v598_v57, %v566_v60  ;;  %v569_v11 = vpop.f32.mrf.mxu0 }
 0x157   :  { %v601_v8 = vpop.f32.mrf.mxu1 }
 0x158   :  { %v602_v16 = vadd.f32 %v601_v8, %v569_v11 }
 0x15f   :  { %v621_v30 = vpop.f32.mrf.mxu2 }
 0x160   :  { %v622_v35 = vadd.f32 %v621_v30, %v590_v33 }
 0x166   :  { %v653_v37 = vpop.f32.mrf.mxu3 }
 0x167   :  { %v654_v38 = vadd.f32 %v653_v37, %v622_v35  ;;  %v624_v39 = vpop.f32.mrf.mxu2 }
 0x168   :  { %v625_v45 = vadd.f32 %v624_v39, %v593_v42 }
 0x169   :  { %v668_v40 = vmax.f32 %v654_v38, 1e-06 }
 0x16b   :  { %733 = vlog2.f32 %v668_v40 }
 0x16e   :  { %v656_v47 = vpop.f32.mrf.mxu3 }
 0x16f   :  { %v657_v48 = vadd.f32 %v656_v47, %v625_v45  ;;  %v627_v49 = vpop.f32.mrf.mxu2 }
 0x170   :  { %v628_v56 = vadd.f32 %v627_v49, %v596_v54 }
 0x171   :  { %v734_v50 = vpop.eup %733  ;;  %v669_v52 = vmax.f32 %v657_v48, 1e-06 }
 0x172   :  { %v674_v53 = vmul.f32 0.6931472, %v734_v50 }
 0x173   :  { %735 = vlog2.f32 %v669_v52 }
 0x174   :  { %v690_v55 = vmul.f32 %v689_v51, %v674_v53 }
 0x176   :  { %695 = vst [vmem:[#allocation8] sm:$0xff] %v690_v55  ;;  %v659_v58 = vpop.f32.mrf.mxu3 }
 0x177   :  { %v660_v59 = vadd.f32 %v659_v58, %v628_v56  ;;  %v630_v61 = vpop.f32.mrf.mxu2 }
 0x178   :  { %v631_v5 = vadd.f32 %v630_v61, %v599_v3 }
 0x179   :  { %v736_v62 = vpop.eup %735  ;;  %v670_v63 = vmax.f32 %v660_v59, 1e-06 }
 0x17a   :  { %v676_v2 = vmul.f32 0.6931472, %v736_v62 }
 0x17b   :  { %737 = vlog2.f32 %v670_v63 }
 0x17c   :  { %v691_v4 = vmul.f32 %v689_v51, %v676_v2 }
 0x17e   :  { %696 = vst [vmem:[#allocation8 + $0x8] sm:$0xff] %v691_v4  ;;  %v662_v6 = vpop.f32.mrf.mxu3 }
 0x17f   :  { %v663_v7 = vadd.f32 %v662_v6, %v631_v5  ;;  %v633_v13 = vpop.f32.mrf.mxu2 }
 0x180   :  { %v634_v18 = vadd.f32 %v633_v13, %v602_v16 }
 0x181   :  { %v738_v9 = vpop.eup %737  ;;  %v671_v10 = vmax.f32 %v663_v7, 1e-06 }
 0x182   :  { %v678_v12 = vmul.f32 0.6931472, %v738_v9 }
 0x183   :  { %739 = vlog2.f32 %v671_v10 }
 0x184   :  { %v692_v17 = vmul.f32 %v689_v51, %v678_v12 }
 0x186   :  { %697 = vst [vmem:[#allocation8 + $0x10] sm:$0xff] %v692_v17  ;;  %v665_v19 = vpop.f32.mrf.mxu3 }
 0x187   :  { %v666_v20 = vadd.f32 %v665_v19, %v634_v18 }
 0x189   :  { %v740_v21 = vpop.eup %739  ;;  %v672_v0 = vmax.f32 %v666_v20, 1e-06 }
 0x18a   :  { %v680_v1 = vmul.f32 0.6931472, %v740_v21 }
 0x18b   :  { %741 = vlog2.f32 %v672_v0 }
 0x18c   :  { %v693_v22 = vmul.f32 %v689_v51, %v680_v1 }
 0x18e   :  { %698 = vst [vmem:[#allocation8 + $0x18] sm:$0xff] %v693_v22 }
 0x191   :  { %v742_v23 = vpop.eup %741 }
 0x192   :  { %v682_v24 = vmul.f32 0.6931472, %v742_v23 }
 0x194   :  { %v694_v25 = vmul.f32 %v689_v51, %v682_v24 }
 0x196   :  { %699 = vst [vmem:[#allocation8 + $0x20] sm:$0xff] %v694_v25 }
 0x197   :  { %712 = dma.vmem_to_hbm [thread:$0]  %s705_s4, 640, %s707_s7, [#allocation4], %s852_s30, %s852_s30, %s853_s0  }
 0x198   :  { %843 = dma.done.wait [#allocation4], 640  }
 0x199   :  { %844 = vsyncadd [#allocation4], 4294966656 }
 0x19a   :  { %717 = vsyncpa [#allocation3], 1 }
 0x19b   :  { %718 = vsyncpa [#allocation6], 1 }
 0x19c   :  { %719 = vsyncpa [#allocation4], 1 }

</bundles_post_ra>
